<compile_context>
chip_gen: v7x
topology: tpu7x:2x2x1
jax: 0.10.0
libtpu: 0.0.40
codegen_flags: <defaults>
</compile_context>

<pallas_src>
import functools

import jax
import jax.numpy as jnp
from jax.experimental import pallas as pl
from jax.experimental.pallas import tpu as pltpu


_LANE = 128
_SUBLANE = 8
_TILE_BYTES = 4 << 20      # target bytes for one streamed input block


def _round_up(n: int, m: int) -> int:
    return -(-n // m) * m


def _cdiv(n: int, m: int) -> int:
    return -(-n // m)


# --------------------------------------------------------------------------
# Generation-aware sizing helpers.
# --------------------------------------------------------------------------
@functools.lru_cache(maxsize=None)
def _vmem_capacity_bytes() -> int:
    """Best-effort physical VMEM size (v5e/v6e: 128 MiB; v7x: 64 MiB/TC)."""
    try:
        cap = int(pltpu.get_tpu_info().vmem_capacity_bytes)
        if cap > 0:
            return cap
    except Exception:
        pass
    return 64 * 1024 * 1024          # conservative fallback (v7x per-TC)


@functools.lru_cache(maxsize=None)
def _num_tensorcores() -> int:
    """Best-effort TensorCores per device (v7x exposes 2); defaults to 1."""
    try:
        return max(1, int(getattr(jax.devices()[0], "num_cores", 1) or 1))
    except Exception:
        return 1


def _scoped_vmem_limit() -> int:
    cap = _vmem_capacity_bytes()
    # 96 MiB on 128 MiB parts, 48 MiB on v7x; never below 32 MiB (v5e default
    # scoped limit is only 16 MiB, which is too small for the fused slabs).
    return max(32 * 1024 * 1024, min(3 * cap // 4, 96 * 1024 * 1024))


def _lane_tile(hw: int, c: int, itemsize: int) -> int:
    """Lane-axis (HW) tile: multiple of 128, one (C, T) block <= ~4 MiB.

    Big tiles (>=512 lanes) reach ~85% of HBM roofline and amortize the
    per-grid-step overhead; double-buffered in+out (~16 MiB) still fits the
    scoped limit on every generation.  T need not divide HW (ragged tail is
    masked in the kernel).
    """
    t = 2048
    while t > _LANE and c * t * itemsize > _TILE_BYTES:
        t //= 2
    return min(t, _round_up(hw, _LANE))


def _sublane_tile(hw: int, c: int, itemsize: int) -> int:
    """Sublane-axis (HW) tile for the channel_last layout."""
    t = 1024
    while t > _SUBLANE and c * t * itemsize > _TILE_BYTES:
        t //= 2
    return min(t, _round_up(hw, _SUBLANE))


def _fused_fits(c: int, hw: int, itemsize: int, param_pad_bytes: int,
                vmem_limit: int) -> bool:
    """Rough VMEM estimate for the fused single-pass kernel."""
    x_bytes = c * hw * itemsize
    est = 2 * 2 * x_bytes            # double-buffered input + output blocks
    est += 2 * c * hw * 4            # fp32 temporaries in the kernel body
    est += 2 * 2 * param_pad_bytes   # padded gamma/beta blocks (not "tiny")
    return est <= 3 * vmem_limit // 4


# --------------------------------------------------------------------------
# Kernels.
# --------------------------------------------------------------------------
def _grn_fused_cf_kernel(x_ref, gamma_ref, beta_ref, o_ref, *, eps: float):
    # channel_first: x_ref (1, C, HW) -- C on sublanes, HW on lanes.
    xf = x_ref[...].astype(jnp.float32)
    gx = jnp.sqrt(jnp.sum(xf * xf, axis=2, keepdims=True))      # (1, C, 1)
    nx = gx / (jnp.mean(gx, axis=1, keepdims=True) + eps)       # (1, C, 1)
    coef = 1.0 + gamma_ref[...] * nx                            # fold affine
    o_ref[...] = (xf * coef + beta_ref[...]).astype(o_ref.dtype)


def _grn_fused_cl_kernel(x_ref, gamma_ref, beta_ref, o_ref, *, eps: float):
    # channel_last: x_ref (1, HW, C) -- HW on sublanes, C on lanes.
    xf = x_ref[...].astype(jnp.float32)
    gx = jnp.sqrt(jnp.sum(xf * xf, axis=1, keepdims=True))      # (1, 1, C)
    nx = gx / (jnp.mean(gx, axis=2, keepdims=True) + eps)       # (1, 1, C)
    coef = 1.0 + gamma_ref[...] * nx
    o_ref[...] = (xf * coef + beta_ref[...]).astype(o_ref.dtype)


def _grn_sumsq_cf_kernel(x_ref, ss_ref, *, hw: int, tile: int):
    # x_ref: (1, C, T) lane tile; ss_ref: (1, 1, C, 1) per-tile partial sums.
    xf = x_ref[...].astype(jnp.float32)
    if hw % tile != 0:
        # Ragged tail: out-of-bounds lanes are undefined on read -> zero them
        # before squaring (static check; the mask is only emitted if needed).
        j = pl.program_id(1)
        lane = jax.lax.broadcasted_iota(jnp.int32, xf.shape, 2)
        xf = jnp.where(j * tile + lane < hw, xf, 0.0)
    ss_ref[...] = jnp.sum(xf * xf, axis=2, keepdims=True).reshape(ss_ref.shape)


def _grn_sumsq_cl_kernel(x_ref, ss_ref, *, hw: int, tile: int):
    # x_ref: (1, S, C) sublane tile; ss_ref: (1, 1, 1, C) per-tile partials.
    xf = x_ref[...].astype(jnp.float32)
    if hw % tile != 0:
        j = pl.program_id(1)
        sub = jax.lax.broadcasted_iota(jnp.int32, xf.shape, 1)
        xf = jnp.where(j * tile + sub < hw, xf, 0.0)
    ss_ref[...] = jnp.sum(xf * xf, axis=1, keepdims=True).reshape(ss_ref.shape)


def _grn_apply_kernel(coef_ref, beta_ref, x_ref, o_ref):
    # Pure streaming pass: out = x * coef + beta.  coef already folds the GRN
    # normalization and gamma (computed once per batch outside the kernel),
    # so the only per-tile work is one vmul + one vadd per vreg.  The ragged
    # tail output block is masked by Pallas on store.
    o_ref[...] = (x_ref[...].astype(jnp.float32) * coef_ref[...]
                  + beta_ref[...]).astype(o_ref.dtype)


# --------------------------------------------------------------------------
# Fused single-pass wrappers (1 HBM read + 1 HBM write).
# --------------------------------------------------------------------------
def _grn_fused_cf(x3, gamma3, beta3, eps, out_dtype, vmem_limit):
    B, C, HW = x3.shape
    return pl.pallas_call(
        functools.partial(_grn_fused_cf_kernel, eps=eps),
        out_shape=jax.ShapeDtypeStruct((B, C, HW), out_dtype),
        grid_spec=pltpu.PrefetchScalarGridSpec(
            num_scalar_prefetch=0,
            grid=(B,),
            in_specs=[
                pl.BlockSpec((1, C, HW), lambda b: (b, 0, 0)),
                pl.BlockSpec((1, C, 1), lambda b: (0, 0, 0)),    # gamma
                pl.BlockSpec((1, C, 1), lambda b: (0, 0, 0)),    # beta
            ],
            out_specs=pl.BlockSpec((1, C, HW), lambda b: (b, 0, 0)),
        ),
        compiler_params=pltpu.CompilerParams(
            dimension_semantics=("parallel",),
            vmem_limit_bytes=vmem_limit),
    )(x3, gamma3, beta3)


def _grn_fused_cl(x3, gamma3, beta3, eps, out_dtype, vmem_limit):
    B, HW, C = x3.shape
    return pl.pallas_call(
        functools.partial(_grn_fused_cl_kernel, eps=eps),
        out_shape=jax.ShapeDtypeStruct((B, HW, C), out_dtype),
        grid_spec=pltpu.PrefetchScalarGridSpec(
            num_scalar_prefetch=0,
            grid=(B,),
            in_specs=[
                pl.BlockSpec((1, HW, C), lambda b: (b, 0, 0)),
                pl.BlockSpec((1, 1, C), lambda b: (0, 0, 0)),    # gamma
                pl.BlockSpec((1, 1, C), lambda b: (0, 0, 0)),    # beta
            ],
            out_specs=pl.BlockSpec((1, HW, C), lambda b: (b, 0, 0)),
        ),
        compiler_params=pltpu.CompilerParams(
            dimension_semantics=("parallel",),
            vmem_limit_bytes=vmem_limit),
    )(x3, gamma3, beta3)


# --------------------------------------------------------------------------
# Two-pass tiled wrappers (bounded VMEM, pad-free ragged tiles, 2R + 1W).
# --------------------------------------------------------------------------
def _grn_two_pass_cf(x3, gamma3, beta3, eps, out_dtype, vmem_limit):
    B, C, HW = x3.shape
    T = _lane_tile(HW, C, x3.dtype.itemsize)
    n_t = _cdiv(HW, T)

    # Pass 1: per-(batch, tile, channel) partial sums of squares.  Every grid
    # step writes its own output block -> both axes "parallel" (v7x megacore
    # gets work even at batch 1), no resident accumulator / pl.when needed.
    partial = pl.pallas_call(
        functools.partial(_grn_sumsq_cf_kernel, hw=HW, tile=T),
        out_shape=jax.ShapeDtypeStruct((B, n_t, C, 1), jnp.float32),
        grid_spec=pltpu.PrefetchScalarGridSpec(
            num_scalar_prefetch=0,
            grid=(B, n_t),
            in_specs=[pl.BlockSpec((1, C, T), lambda b, j: (b, 0, j))],
            out_specs=pl.BlockSpec((1, 1, C, 1), lambda b, j: (b, j, 0, 0)),
        ),
        compiler_params=pltpu.CompilerParams(
            dimension_semantics=("parallel", "parallel"),
            vmem_limit_bytes=vmem_limit),
    )(x3)

    # Tiny per-(batch, channel) coefficient, computed once outside the
    # streaming pass (removes per-tile sqrt / mean / divide and the per-tile
    # sumsq/gamma re-DMA): out = x * coef + beta.
    sumsq = jnp.sum(partial, axis=1)                              # (B, C, 1)
    gx = jnp.sqrt(sumsq)
    nx = gx / (jnp.mean(gx, axis=1, keepdims=True) + eps)
    coef = 1.0 + gamma3 * nx                                      # (B, C, 1)

    # Pass 2: pure x * coef + beta stream; ragged tail stores masked by Pallas.
    return pl.pallas_call(
        _grn_apply_kernel,
        out_shape=jax.ShapeDtypeStruct((B, C, HW), out_dtype),
        grid_spec=pltpu.PrefetchScalarGridSpec(
            num_scalar_prefetch=0,
            grid=(B, n_t),
            in_specs=[
                pl.BlockSpec((1, C, 1), lambda b, j: (b, 0, 0)),  # coef
                pl.BlockSpec((1, C, 1), lambda b, j: (0, 0, 0)),  # beta
                pl.BlockSpec((1, C, T), lambda b, j: (b, 0, j)),  # x
            ],
            out_specs=pl.BlockSpec((1, C, T), lambda b, j: (b, 0, j)),
        ),
        compiler_params=pltpu.CompilerParams(
            dimension_semantics=("parallel", "parallel"),
            vmem_limit_bytes=vmem_limit),
    )(coef, beta3, x3)


def _grn_two_pass_cl(x3, gamma3, beta3, eps, out_dtype, vmem_limit):
    B, HW, C = x3.shape
    S = _sublane_tile(HW, C, x3.dtype.itemsize)
    n_s = _cdiv(HW, S)

    partial = pl.pallas_call(
        functools.partial(_grn_sumsq_cl_kernel, hw=HW, tile=S),
        out_shape=jax.ShapeDtypeStruct((B, n_s, 1, C), jnp.float32),
        grid_spec=pltpu.PrefetchScalarGridSpec(
            num_scalar_prefetch=0,
            grid=(B, n_s),
            in_specs=[pl.BlockSpec((1, S, C), lambda b, j: (b, j, 0))],
            out_specs=pl.BlockSpec((1, 1, 1, C), lambda b, j: (b, j, 0, 0)),
        ),
        compiler_params=pltpu.CompilerParams(
            dimension_semantics=("parallel", "parallel"),
            vmem_limit_bytes=vmem_limit),
    )(x3)

    sumsq = jnp.sum(partial, axis=1)                              # (B, 1, C)
    gx = jnp.sqrt(sumsq)
    nx = gx / (jnp.mean(gx, axis=2, keepdims=True) + eps)
    coef = 1.0 + gamma3 * nx                                      # (B, 1, C)

    return pl.pallas_call(
        _grn_apply_kernel,
        out_shape=jax.ShapeDtypeStruct((B, HW, C), out_dtype),
        grid_spec=pltpu.PrefetchScalarGridSpec(
            num_scalar_prefetch=0,
            grid=(B, n_s),
            in_specs=[
                pl.BlockSpec((1, 1, C), lambda b, j: (b, 0, 0)),  # coef
                pl.BlockSpec((1, 1, C), lambda b, j: (0, 0, 0)),  # beta
                pl.BlockSpec((1, S, C), lambda b, j: (b, j, 0)),  # x
            ],
            out_specs=pl.BlockSpec((1, S, C), lambda b, j: (b, j, 0)),
        ),
        compiler_params=pltpu.CompilerParams(
            dimension_semantics=("parallel", "parallel"),
            vmem_limit_bytes=vmem_limit),
    )(coef, beta3, x3)


# --------------------------------------------------------------------------
# Public wrapper (mirrors the PyTorch module's forward).
# --------------------------------------------------------------------------
def grn_forward(x: jax.Array, gamma: jax.Array, beta: jax.Array,
                eps: float = 1e-6, data_format: str = "channel_first",
                force_two_pass: bool = False) -> jax.Array:
    vmem_limit = _scoped_vmem_limit()
    out_dtype = x.dtype

    if data_format == "channel_first":
        B, C, H, W = x.shape
        HW = H * W
        x3 = x.reshape(B, C, HW)                                  # free reshape
        gamma3 = gamma.reshape(1, C, 1).astype(jnp.float32)
        beta3 = beta.reshape(1, C, 1).astype(jnp.float32)
        # (1, C, 1) parameter blocks pad to (C, 128) lanes in VMEM.
        param_pad = _round_up(C, _SUBLANE) * _LANE * 4
        use_fused = (not force_two_pass and
                     _fused_fits(C, HW, x.dtype.itemsize, param_pad, vmem_limit))
        if use_fused and B == 1 and _num_tensorcores() > 1:
            # Multi-TensorCore parts (v7x): grid=(B,) leaves a core idle at
            # batch 1; the tiled path exposes two "parallel" grid axes.
            if HW > _lane_tile(HW, C, x.dtype.itemsize):
                use_fused = False
        if use_fused:
            out3 = _grn_fused_cf(x3, gamma3, beta3, eps, out_dtype, vmem_limit)
        else:
            out3 = _grn_two_pass_cf(x3, gamma3, beta3, eps, out_dtype, vmem_limit)
        return out3.reshape(B, C, H, W)

    if data_format == "channel_last":
        B, H, W, C = x.shape
        HW = H * W
        x3 = x.reshape(B, HW, C)                                  # free reshape
        gamma3 = gamma.reshape(1, 1, C).astype(jnp.float32)       # lane-dense
        beta3 = beta.reshape(1, 1, C).astype(jnp.float32)
        param_pad = _SUBLANE * _round_up(C, _LANE) * 4
        use_fused = (not force_two_pass and
                     _fused_fits(C, HW, x.dtype.itemsize, param_pad, vmem_limit))
        if use_fused and B == 1 and _num_tensorcores() > 1:
            if HW > _sublane_tile(HW, C, x.dtype.itemsize):
                use_fused = False
        if use_fused:
            out3 = _grn_fused_cl(x3, gamma3, beta3, eps, out_dtype, vmem_limit)
        else:
            out3 = _grn_two_pass_cl(x3, gamma3, beta3, eps, out_dtype, vmem_limit)
        return out3.reshape(B, H, W, C)

    # The PyTorch module silently returns x for any other data_format.
    return x


def grn_reference(x_nchw, gamma, beta, eps=1e-6):
    """Pure-JAX reference matching the PyTorch channel_first branch."""
    xf = x_nchw.astype(jnp.float32)
    gx = jnp.sqrt(jnp.sum(xf * xf, axis=(2, 3), keepdims=True))   # (B, C, 1, 1)
    nx = gx / (jnp.mean(gx, axis=1, keepdims=True) + eps)
    g = gamma.reshape(1, -1, 1, 1).astype(jnp.float32)
    b = beta.reshape(1, -1, 1, 1).astype(jnp.float32)
    return (g * (xf * nx) + b + xf).astype(x_nchw.dtype)


if __name__ == "__main__":
    key = jax.random.PRNGKey(0)
    kx, kg, kb, kx2 = jax.random.split(key, 4)

    # ---- primary shapes (small, per spec) ---------------------------------
    B, C, H, W = 2, 4, 16, 16
    x = jax.random.normal(kx, (B, C, H, W), dtype=jnp.float32)
    # nn.Parameter(torch.zeros(C)) in __init__; deterministic non-zero values
    # here so the normalization path is actually exercised.
    gamma = jax.random.normal(kg, (C,), dtype=jnp.float32) * 0.1
    beta = jax.random.normal(kb, (C,), dtype=jnp.float32) * 0.1

    ref = grn_reference(x, gamma, beta)
    tol = dict(atol=1e-3, rtol=1e-3)

    # channel_first, fused single-pass path.
    out = jax.block_until_ready(grn_forward(x, gamma, beta))
    assert out.shape == (B, C, H, W)
    assert jnp.allclose(out, ref, **tol), "channel_first fused mismatch"

    # channel_first, two-pass tiled path.
    out2 = jax.block_until_ready(grn_forward(x, gamma, beta, force_two_pass=True))
    assert jnp.allclose(out2, ref, **tol), "channel_first two-pass mismatch"

    # channel_last, both paths (same math, NHWC layout).
    x_cl = jnp.transpose(x, (0, 2, 3, 1))
    ref_cl = jnp.transpose(ref, (0, 2, 3, 1))
    out_cl = jax.block_until_ready(
        grn_forward(x_cl, gamma, beta, data_format="channel_last"))
    assert out_cl.shape == (B, H, W, C)
    assert jnp.allclose(out_cl, ref_cl, **tol), "channel_last fused mismatch"
    out_cl2 = jax.block_until_ready(
        grn_forward(x_cl, gamma, beta, data_format="channel_last",
                    force_two_pass=True))
    assert jnp.allclose(out_cl2, ref_cl, **tol), "channel_last two-pass mismatch"

    # ---- ragged spatial extent (HW not a multiple of 128 / tile size) -----
    # Exercises the pad-free masked-tail tiles in both two-pass layouts.
    B2, C2, H2, W2 = 2, 8, 48, 48          # HW = 2304 = 2048 + 256 (ragged)
    xr = jax.random.normal(kx2, (B2, C2, H2, W2), dtype=jnp.float32)
    gr = jnp.linspace(-0.2, 0.2, C2, dtype=jnp.float32)
    br = jnp.linspace(0.1, -0.1, C2, dtype=jnp.float32)
    ref_r = grn_reference(xr, gr, br)

    out_r = jax.block_until_ready(grn_forward(xr, gr, br, force_two_pass=True))
    assert jnp.allclose(out_r, ref_r, **tol), "ragged channel_first mismatch"

    out_r_cl = jax.block_until_ready(
        grn_forward(jnp.transpose(xr, (0, 2, 3, 1)), gr, br,
                    data_format="channel_last", force_two_pass=True))
    assert jnp.allclose(out_r_cl, jnp.transpose(ref_r, (0, 2, 3, 1)), **tol), \
        "ragged channel_last mismatch"

    print("KERNEL_OK")
</pallas_src>

<mosaic_0001>
module attributes {stable_mosaic.version = 11 : i64} {
  func.func @_grn_fused_cf_kernel(%arg0: i32, %arg1: memref<1x4x256xf32, #tpu.memory_space<vmem>>, %arg2: memref<1x4x1xf32, #tpu.memory_space<vmem>>, %arg3: memref<1x4x1xf32, #tpu.memory_space<vmem>>, %arg4: memref<1x4x256xf32, #tpu.memory_space<vmem>>) attributes {dimension_semantics = [#tpu.dimension_semantics<parallel>], iteration_bounds = array<i64: 2>, scalar_prefetch = 0 : i64, scratch_operands = 0 : i64, tpu.core_type = #tpu.core_type<tc>, window_params = [{transform_indices = @transform_0, window_bounds = array<i64: 1, 4, 256>}, {pipeline_mode = #tpu.pipeline_mode<synchronous>, transform_indices = @transform_1, window_bounds = array<i64: 1, 4, 1>}, {pipeline_mode = #tpu.pipeline_mode<synchronous>, transform_indices = @transform_2, window_bounds = array<i64: 1, 4, 1>}, {transform_indices = @transform_3, window_bounds = array<i64: 1, 4, 256>}]} {
    %c0 = arith.constant 0 : index
    %c0_0 = arith.constant 0 : index
    %c0_1 = arith.constant 0 : index
    %0 = vector.load %arg1[%c0, %c0_0, %c0_1] : memref<1x4x256xf32, #tpu.memory_space<vmem>>, vector<1x4x256xf32>
    %1 = arith.mulf %0, %0 : vector<1x4x256xf32>
    %cst = arith.constant dense<0.000000e+00> : vector<1x4xf32>
    %2 = vector.multi_reduction <add>, %1, %cst [2] : vector<1x4x256xf32> to vector<1x4xf32>
    %3 = vector.shape_cast %2 : vector<1x4xf32> to vector<1x4x1xf32>
    %4 = math.sqrt %3 : vector<1x4x1xf32>
    %cst_2 = arith.constant dense<0.000000e+00> : vector<1x1xf32>
    %5 = vector.multi_reduction <add>, %4, %cst_2 [1] : vector<1x4x1xf32> to vector<1x1xf32>
    %6 = vector.shape_cast %5 : vector<1x1xf32> to vector<1x1x1xf32>
    %cst_3 = arith.constant 4.000000e+00 : f32
    %7 = vector.broadcast %cst_3 : f32 to vector<1x1x1xf32>
    %8 = arith.divf %6, %7 : vector<1x1x1xf32>
    %cst_4 = arith.constant 9.99999997E-7 : f32
    %9 = vector.broadcast %cst_4 : f32 to vector<1x1x1xf32>
    %10 = arith.addf %8, %9 : vector<1x1x1xf32>
    %11 = vector.broadcast %10 : vector<1x1x1xf32> to vector<1x4x1xf32>
    %12 = arith.divf %4, %11 : vector<1x4x1xf32>
    %c0_5 = arith.constant 0 : index
    %c0_6 = arith.constant 0 : index
    %c0_7 = arith.constant 0 : index
    %13 = vector.load %arg2[%c0_5, %c0_6, %c0_7] : memref<1x4x1xf32, #tpu.memory_space<vmem>>, vector<1x4x1xf32>
    %14 = arith.mulf %13, %12 : vector<1x4x1xf32>
    %cst_8 = arith.constant 1.000000e+00 : f32
    %15 = vector.broadcast %cst_8 : f32 to vector<1x4x1xf32>
    %16 = arith.addf %15, %14 : vector<1x4x1xf32>
    %17 = vector.broadcast %16 : vector<1x4x1xf32> to vector<1x4x256xf32>
    %18 = arith.mulf %0, %17 : vector<1x4x256xf32>
    %c0_9 = arith.constant 0 : index
    %c0_10 = arith.constant 0 : index
    %c0_11 = arith.constant 0 : index
    %19 = vector.load %arg3[%c0_9, %c0_10, %c0_11] : memref<1x4x1xf32, #tpu.memory_space<vmem>>, vector<1x4x1xf32>
    %20 = vector.broadcast %19 : vector<1x4x1xf32> to vector<1x4x256xf32>
    %21 = arith.addf %18, %20 : vector<1x4x256xf32>
    %c0_12 = arith.constant 0 : index
    %c0_13 = arith.constant 0 : index
    %c0_14 = arith.constant 0 : index
    %22 = vector.load %arg4[%c0_12, %c0_13, %c0_14] : memref<1x4x256xf32, #tpu.memory_space<vmem>>, vector<1x4x256xf32>
    tpu.vector_store %arg4[%c0_12, %c0_13, %c0_14], %21 {strides = array<i32>} : memref<1x4x256xf32, #tpu.memory_space<vmem>>, vector<1x4x256xf32>,
    return
  }
  func.func @transform_0(%arg0: i32) -> (i32, i32, i32) {
    %c0_i32 = arith.constant 0 : i32
    %c0_i32_0 = arith.constant 0 : i32
    %c0_i32_1 = arith.constant 0 : i32
    return %arg0, %c0_i32, %c0_i32_0 : i32, i32, i32
  }
  func.func @transform_1(%arg0: i32) -> (i32, i32, i32) {
    %c0_i32 = arith.constant 0 : i32
    %c0_i32_0 = arith.constant 0 : i32
    %c0_i32_1 = arith.constant 0 : i32
    %c0_i32_2 = arith.constant 0 : i32
    return %c0_i32, %c0_i32_0, %c0_i32_1 : i32, i32, i32
  }
  func.func @transform_2(%arg0: i32) -> (i32, i32, i32) {
    %c0_i32 = arith.constant 0 : i32
    %c0_i32_0 = arith.constant 0 : i32
    %c0_i32_1 = arith.constant 0 : i32
    %c0_i32_2 = arith.constant 0 : i32
    return %c0_i32, %c0_i32_0, %c0_i32_1 : i32, i32, i32
  }
  func.func @transform_3(%arg0: i32) -> (i32, i32, i32) {
    %c0_i32 = arith.constant 0 : i32
    %c0_i32_0 = arith.constant 0 : i32
    %c0_i32_1 = arith.constant 0 : i32
    return %arg0, %c0_i32, %c0_i32_0 : i32, i32, i32
  }
}

</mosaic_0001>

<bundles_post_ra>
// kernel: tpu_custom_call.1
= control target key start
LH: loop header
LB: loop body
LE: loop exit
PB: predicated region body
PF: predicated region fallthrough
CT: control target
= control target key end

     0   :  { %8 = vsyncpa [#allocation3], 0  ;;  %s699_s0 = inlined_call_operand.hbm [shape: f32[2,4,256], index: 0, kind: input, shape index: {}]   ;;  %s700_s1 = inlined_call_operand.vmem [shape: f32[1,4,1], index: 1, kind: input, shape index: {}]   ;;  %s701_s2 = inlined_call_operand.vmem [shape: f32[1,4,1], index: 2, kind: input, shape index: {}]   ;;  %s702_s3 = inlined_call_operand.hbm [shape: f32[2,4,256], index: 3, kind: output, shape index: {}]  }
   0x1   :  { %10 = vsyncpa [#allocation3 + $0x1], 0 }
   0x2   :  { %11 = vsyncpa [#allocation4], 0 }
   0x3   :  { %13 = vsyncpa [#allocation4 + $0x1], 0  ;;  %s525_s12 = smov 0   ;;  %s527_s13 = smov 0  }
   0x4   :  { %s529_s14 = smov 0   ;;  %s531_s15 = smov 0  }
   0x5 LB: > { %s546_s16 = sadd.s32 4294967295, %s499_s15   ;;  %s333_s17 = sadd.s32 4294967294, %s499_s15   ;;  %s499_s15 = sphi %s531_s15, %s717_s15   ;;  %s495_s14 = sphi %s529_s14, %s716_s14   ;;  %s491_s13 = sphi %s527_s13, %s715_s13   ;;  %s487_s12 = sphi %s525_s12, %s714_s12  }
   0x6   : > { %s550_s18 = sadd.s32 1, %s499_s15   ;;  %s26_s19 = sadd.s32 1, %s495_s14 }
   0x7   : > { %s23_s20 = ssub.s32 %s499_s15, %s550_s18  ;;  %p33_p0 = scmp.ne.s32.totalorder %s495_s14, %s491_s13 }
   0x8   : > { %p24_p1 = scmp.eq.s32.totalorder %s23_s20, 0  ;;  %p34_p2 = scmp.eq.s32.totalorder %s499_s15, 0 }
   0x9   : > { %p39_p3 = scmp.ne.s32.totalorder %s491_s13, %s487_s12  ;;  %p40_p4 = scmp.eq.s32.totalorder %s546_s16, 0 }
   0xa   : > { %s562_s21 = scalar_select %p24_p1, %s495_s14, %s26_s19  }
   0xb   : > { %p564_p5 = por %p34_p2, %p33_p0  ;;  %p568_p6 = por %p40_p4, %p39_p3 }
   0xc   : > { %p105_p7 = scmp.eq.s32.totalorder %s546_s16, 1  ;;  %p111_p8 = scmp.eq.s32.totalorder %s333_s17, 1 }
   0xd   : > { %p361_p10 = scmp.lt.s32.totalorder %s499_s15, 2  ;;  %s137_s26 = sand.u32 1, %s495_s14  }
   0xe   : > { %p575_p11 = por %p105_p7, %p33_p0  ;;  %p579_p12 = por %p111_p8, %p39_p3 }
   0xf   : > { %s347_s27 = sshll.u32 %s499_s15, 7  ;;  %s336_s28 = sshll.u32 %s137_s26, 3 }
  0x10   : > { %s706_s24 = scalar_select %p575_p11, 1, 0 }
  0x11   : > { %s707_s25 = scalar_select %p579_p12, 1, 0 }
  0x12   : > { %s588_s4 = scalar_lea.hbm %s699_s0, %s347_s27  ;;  %s141_s5 = scalar_lea.vmem [#allocation2], %s336_s28 }
  0x13   : > { %s149_s6 = sshll.u32 %s141_s5, 4  ;;  %p592_p13 = pnand %p361_p10, %p564_p5  ;;  %s596_s6 = int_to_ptr.vmem [resolvable:$true] %s149_s6 }
  0x14   : > { %s138_s8 = scalar_lea.sflag [#allocation3], %s137_s26  ;;  %s403_s9 = scalar_lea.hbm %s588_s4, 128 }
  0x15   : > { %p404_p2 = scmp.ne.s32.totalorder %s588_s4, %s403_s9  ;;  %p405_p3 = pneg %p592_p13 }
  0x16   : > { %s408_s17 = scalar_lea.hbm %s699_s0, 256  ;;  %p409_p5 = scmp.lt.u32.totalorder %s588_s4, %s699_s0 }
  0x17   : > { %p406_p4 = pnand %p405_p3, %p404_p2  ;;  %p410_p8 = scmp.lt.u32.totalorder %s408_s17, %s403_s9 }
  0x18   : > { %p412_p9 = scmp.lt.u32.totalorder %s403_s9, %s588_s4 }
  0x19   : > { %p407_p7 = pneg %p406_p4  ;;  %p411_p10 = por %p410_p8, %p409_p5 }
  0x1b   : > { %p413_p0 = por %p412_p9, %p411_p10 }
  0x1d   : > { %p414_p1 = pnand %p413_p0, %p407_p7 }
  0x1f   : > { %417 = shalt.err (!%p414_p1)
}
  0x20   : > { %s418_s22 = scalar_lea.vmem %s596_s6, 128  ;;  %s501_s26 = smov [#allocation2]  }
  0x21   : > { %p419_p2 = scmp.ne.s32.totalorder %s596_s6, %s418_s22  ;;  %s423_s27 = sshll.u32 %s501_s26, 4  ;;  %s424_s27 = int_to_ptr.vmem [resolvable:$false] %s423_s27 }
  0x22   : > { %s425_s28 = scalar_lea.vmem %s424_s27, 256  ;;  %p426_p11 = scmp.lt.s32.totalorder %s596_s6, %s424_s27 }
  0x23   : > { %p421_p4 = pnand %p419_p2, %p405_p3  ;;  %p427_p5 = scmp.lt.s32.totalorder %s425_s28, %s418_s22 }
  0x25   : > { %p422_p12 = pneg %p421_p4  ;;  %p428_p8 = por %p427_p5, %p426_p11 }
  0x27   : > { %p429_p9 = pnand %p428_p8, %p422_p12 }
  0x29   : > { %432 = shalt.err (!%p429_p9)
}
  0x2a   : > { %356 = dma.hbm_to_vmem [thread:$0]  (!%p592_p13), %s588_s4, 128, %s596_s6, %s138_s8  }
  0x2b   : > { %p709_p0 = scmp.lt.s32.totalorder %s499_s15, 3  ;;  %p710_p1 = scmp.ge.s32.totalorder %s499_s15, 1 }
  0x2d   : > { %p155_p3 = pnand %p710_p1, %p709_p0 }
  0x2e   : > { %s630_s29 = sand.u32 (!%p155_p3), 1, %s491_s13  }
  0x2f   : > { %158 = sbr.rel (%p155_p3) target bundleno = 402 (0x192), region = 32  ;;  %s340_s30 = sshll.u32 (!%p155_p3), %s630_s29, 3 }
  0x30   : > { %s161_s5 = scalar_lea.sflag (!%p155_p3), [#allocation3], %s630_s29  ;;  %s164_s7 = scalar_lea.vmem (!%p155_p3), [#allocation2], %s340_s30 }
  0x36   : > { %478 = dma.done.wait (%p568_p6), %s161_s5, 128  }
  0x37   : > { %480 = vsyncadd (%p568_p6), %s161_s5, 4294967168  ;;  %v187_v0 = vld [vmem:[%s164_s7] sm:$0xff]  ;;  %vm192_vm0 = vcmask 1043456   ;;  %v502_v6 = vmov 0   ;;  %v503_v28 = vmov 839922192   ;;  %v227_v30 = vlaneseq }
  0x38   : > { %v188_v1 = vmul.f32 %v187_v0, %v187_v0  ;;  %397 = vset.pattern.permute.xlu0 %v502_v6  ;;  %398 = vset.pattern.permute.xlu1 %v502_v6  ;;  %v233_v7 = vld [vmem:[%s701_s2] sm:$0xf]  ;;  %v225_v29 = vunpack.c.l.s4 %v503_v28  ;;  %s348_s9 = sshll.u32 %s546_s16, 7  ;;  %s186_s10 = scalar_lea.vmem [#allocation5], %s340_s30 }
  0x39   : > { %236 = vperm.xlu1 %398, %v233_v7   ;;  %v217_v24 = vld [vmem:[%s700_s1] sm:$0xf]  ;;  %v228_v32 = vshrl.u32 %v227_v30, 7  ;;  %s263_s11 = sshll.u32 %s186_s10, 4  ;;  %s655_s20 = scalar_lea.hbm %s702_s3, %s348_s9  ;;  %s657_s11 = int_to_ptr.vmem [resolvable:$true] %s263_s11 }
  0x3a   : > { %v190_v2 = vcombine.high %v188_v1, %v188_v1  ;;  %v193_v3 = vsel %vm192_vm0, %v188_v1, 0.0  ;;  %v226_v31 = vunpack.c.0.s8 %v225_v29  ;;  %s249_s22 = scalar_lea.sflag [#allocation4], %s630_s29  ;;  %s433_s26 = scalar_lea.vmem %s657_s11, 128 }
  0x3b   : > { %p434_p6 = scmp.ne.s32.totalorder %s657_s11, %s433_s26  ;;  %p711_p11 = scmp.ne.s32.totalorder %s706_s24, 0 }
  0x3c   : > { %v194_v4 = vsel %vm192_vm0, %v190_v2, 0.0  ;;  %v229_v33 = vsub.s32 %v226_v31, %v228_v32  ;;  %s504_s16 = smov [#allocation5]  }
  0x3d   : > { %v195_v5 = vadd.f32 %v194_v4, %v193_v3  ;;  %p435_p12 = pnand %p434_p6, %p711_p11  ;;  %s437_s27 = sshll.u32 %s504_s16, 4  ;;  %s438_s27 = int_to_ptr.vmem [resolvable:$false] %s437_s27 }
  0x3e   : > { %s439_s28 = scalar_lea.vmem %s438_s27, 256  ;;  %p440_p7 = scmp.lt.s32.totalorder %s657_s11, %s438_s27 }
  0x3f   : > { %196 = vadd.xlane.f32.xlu0 %v195_v5  ;;  %p436_p13 = pneg %p435_p12  ;;  %p441_p10 = scmp.lt.s32.totalorder %s439_s28, %s433_s26 }
  0x41   : > { %p442_p2 = por %p441_p10, %p440_p7 }
  0x43   : > { %p443_p4 = pnand %p442_p2, %p436_p13 }
  0xb8   : > { %v237_v34 = vpop.permute.xlu1 %236 }
  0xb9   : > { %v244_v37 = vrot.slane %v237_v34, %v229_v33 }
  0xcc   : > { %v197_v8 = vpop.xlane.xlu0 %196 }
  0xcd   : > { %399 = vrsqrt.f32 %v197_v8  ;;  %vm200_vm1 = vcmp.eq.f32.partialorder %v197_v8, inf  ;;  %v203_v11 = vand.u32 2147483648, %v197_v8  ;;  %vm202_vm2 = vcmp.eq.f32.partialorder %v197_v8, 0.0 }
  0xd7   : > { %v400_v9 = vpop.eup %399 }
  0xd8   : > { %v199_v10 = vmul.f32 %v400_v9, %v197_v8 }
  0xda   : > { %v201_v12 = vsel %vm200_vm1, %v197_v8, %v199_v10 }
  0xdb   : > { %v204_v13 = vsel %vm202_vm2, %v203_v11, %v201_v12 }
  0xdc   : > { %v205_v14 = vsel %vm192_vm0, %v204_v13, 0.0 }
  0xdd   : > { %v206_v15 = vrot.slane %v205_v14, 4 }
  0xdf   : > { %v207_v16 = vadd.f32 %v206_v15, %v205_v14 }
  0xe1   : > { %v208_v17 = vrot.slane %v207_v16, 2 }
  0xe3   : > { %v209_v18 = vadd.f32 %v208_v17, %v207_v16 }
  0xe5   : > { %v210_v19 = vrot.slane %v209_v18, 1 }
  0xe7   : > { %v211_v20 = vadd.f32 %v210_v19, %v209_v18 }
  0xe9   : > { %v213_v21 = vmul.f32 0.25, %v211_v20 }
  0xeb   : > { %v214_v22 = vadd.f32 1e-06, %v213_v21 }
  0xed   : > { %401 = vrcp.f32 %v214_v22 }
  0xf7   : > { %v402_v23 = vpop.eup %401 }
  0xf8   : > { %v216_v25 = vmul.f32 %v402_v23, %v204_v13 }
  0xfa   : > { %v218_v26 = vmul.f32 %v217_v24, %v216_v25 }
  0xfc   : > { %v219_v27 = vadd.f32 1.0, %v218_v26 }
  0xfe   : > { %222 = vperm.xlu0 %397, %v219_v27  }
 0x17d   : > { %v223_v35 = vpop.permute.xlu0 %222 }
 0x17e   : > { %v230_v36 = vrot.slane %v223_v35, %v229_v33 }
 0x180   : > { %v232_v38 = vmul.f32 %v230_v36, %v187_v0 }
 0x182   : > { %v246_v39 = vadd.f32 %v244_v37, %v232_v38 }
 0x184   : > { %247 = vst [vmem:[%s186_s10] sm:$0xff] %v246_v39 }
 0x185   : > { %446 = shalt.err (!%p443_p4)
}
 0x186   : > { %s447_s29 = scalar_lea.hbm %s655_s20, 128  ;;  %s451_s7 = scalar_lea.hbm %s702_s3, 256 }
 0x187   : > { %p448_p5 = scmp.ne.s32.totalorder %s655_s20, %s447_s29  ;;  %p452_p0 = scmp.lt.u32.totalorder %s655_s20, %s702_s3 }
 0x188   : > { %p453_p1 = scmp.lt.u32.totalorder %s451_s7, %s447_s29  ;;  %p455_p6 = scmp.lt.u32.totalorder %s447_s29, %s655_s20 }
 0x189   : > { %p449_p8 = pnand %p448_p5, %p711_p11 }
 0x18a   : > { %p454_p3 = por %p453_p1, %p452_p0 }
 0x18b   : > { %p450_p9 = pneg %p449_p8 }
 0x18c   : > { %p456_p12 = por %p455_p6, %p454_p3 }
 0x18e   : > { %p457_p13 = pnand %p456_p12, %p450_p9 }
 0x190   : > { %460 = shalt.err (!%p457_p13)
}
 0x191   : > { %351 = dma.vmem_to_hbm [thread:$0]  (%p711_p11), %s657_s11, 128, %s655_s20, %s249_s22  }
 0x192 PF: > { %s275_s23 = sand.u32 1, %s487_s12   ;;  %p712_p7 = scmp.ne.s32.totalorder %s707_s25, 0 }
 0x193   : > { %p713_p10 = scmp.ge.s32.totalorder %s499_s15, 2  ;;  %s276_s8 = scalar_lea.sflag [#allocation4], %s275_s23 }
 0x195   : > { %p358_p2 = pnand %p713_p10, %p712_p7 }
 0x197   : > { %482 = dma.done.wait (!%p358_p2), %s276_s8, 128  }
 0x198   : > { %484 = vsyncadd (!%p358_p2), %s276_s8, 4294967168  ;;  %p16_p4 = scmp.ge.s32.totalorder %s550_s18, 4   ;;  %s714_s12 = smov %s491_s13 }
 0x199   : > { %s715_s13 = smov %s495_s14  ;;  %s716_s14 = smov %s562_s21 }
 0x19a   : > { %s717_s15 = smov %s550_s18  ;;  %18 = sbr.rel (!%p16_p4) target bundleno = 5 (0x5), region = 77 }
 0x1a1   :  { %281 = vsyncpa [#allocation3], 1 }
 0x1a2   :  { %283 = vsyncpa [#allocation3 + $0x1], 1 }
 0x1a3   :  { %284 = vsyncpa [#allocation4], 1 }
 0x1a4   :  { %286 = vsyncpa [#allocation4 + $0x1], 1 }

</bundles_post_ra>
